<compile_context>
chip_gen: v5e
topology: v5e:2x2
jax: 0.10.0
libtpu: 0.0.40
codegen_flags: <defaults>
</compile_context>

<pallas_src>
import math

import jax
import jax.numpy as jnp
from jax.experimental import pallas as pl
from jax.experimental.pallas import tpu as pltpu

EPS_IN = 1e-5   # nn.InstanceNorm1d default eps
EPS_BN = 1e-5   # nn.BatchNorm1d default eps (training mode -> batch stats)
LANE = 128

_VMEM = pl.BlockSpec(memory_space=pltpu.MemorySpace.VMEM)


# ---------------------------------------------------------------------------
# Single fused kernel for the whole forward pass
# ---------------------------------------------------------------------------
def make_tspn_kernel(B, L, layer_num, w_offsets, w_shapes, b_widths):
    # Weight-slab section order: [wcomb_0..wcomb_{ln-1}, wfe, w1, w2]
    # Bias-slab row order:       [bcomb_0..bcomb_{ln-1}, bfe, gamma, beta, b1, b2]

    def instance_norm(v):
        # v: (B*L, C). Per-(batch, channel) normalization over L
        # (biased variance, affine=False) == InstanceNorm1d.
        C = v.shape[1]
        v3 = v.reshape(B, L, C)                         # tile-aligned (L % 8 == 0)
        mu = jnp.mean(v3, axis=1, keepdims=True)
        var = jnp.mean(jnp.square(v3 - mu), axis=1, keepdims=True)
        return ((v3 - mu) * jax.lax.rsqrt(var + EPS_IN)).reshape(B * L, C)

    def batch_norm(f, gamma, beta):
        # Training-mode BatchNorm1d: biased batch stats over axis 0.
        mu = jnp.mean(f, axis=0, keepdims=True)
        var = jnp.mean(jnp.square(f - mu), axis=0, keepdims=True)
        return (f - mu) * jax.lax.rsqrt(var + EPS_BN) * gamma + beta

    def load_w(w_ref, idx):
        r0 = w_offsets[idx]
        h, w = w_shapes[idx]
        return w_ref[pl.ds(r0, h), pl.ds(0, w)]

    def load_b(b_ref, idx):
        return b_ref[pl.ds(idx, 1), pl.ds(0, b_widths[idx])]

    def kernel(x_ref, w_ref, b_ref, o_ref):
        x = x_ref[...]                                   # (B*L, Cin)

        # abs/square channel mask, hoisted out of the layer loop (cout static
        # and identical across layers).
        cout = w_shapes[0][1] // 2
        ch = jax.lax.broadcasted_iota(jnp.int32, (B * L, cout), 1)
        is_abs = ch < (cout // 2)

        # -------- SignalProcessingLayers (statically unrolled) --------
        for li in range(layer_num):
            wcomb = load_w(w_ref, li)                    # (Cin_l, 2*Cout): [main|skip]
            bcomb = load_b(b_ref, li)                    # (1, 2*Cout)
            nx = instance_norm(x)
            # One fused matmul for main (softmaxed sparse) + skip (sparse).
            y = jnp.dot(nx, wcomb, preferred_element_type=jnp.float32) + bcomb
            main = y[:, :cout]
            skip = y[:, cout:]
            # signal-processing modules on channel halves: [abs, square]
            x = jnp.where(is_abs, jnp.abs(main), main * main) + skip

        # -------- FeatureExtractorLayer --------
        wfe = load_w(w_ref, layer_num)                   # (C, C)
        bfe = load_b(b_ref, layer_num)                   # (1, C)
        nx = instance_norm(x)
        yf = jnp.dot(nx, wfe, preferred_element_type=jnp.float32) + bfe
        C = yf.shape[1]
        yf3 = yf.reshape(B, L, C)
        f_mean = jnp.mean(yf3, axis=1)                   # (B, C)
        f_max = jnp.max(yf3, axis=1)                     # (B, C)
        f = jnp.concatenate([f_mean, f_max], axis=1)     # (B, 2C)  tiny lane concat

        gamma = load_b(b_ref, layer_num + 1)             # (1, 2C)
        beta = load_b(b_ref, layer_num + 2)              # (1, 2C)
        f = batch_norm(f, gamma, beta)

        # -------- Classifier: Linear(2C,128) -> ReLU -> Linear(128, nc) ------
        w1 = load_w(w_ref, layer_num + 1)                # (2C, 128)
        b1 = load_b(b_ref, layer_num + 3)                # (1, 128)
        w2 = load_w(w_ref, layer_num + 2)                # (128, nc)
        b2 = load_b(b_ref, layer_num + 4)                # (1, nc)
        h = jnp.dot(f, w1, preferred_element_type=jnp.float32) + b1
        h = jnp.maximum(h, 0.0)
        o_ref[...] = jnp.dot(h, w2, preferred_element_type=jnp.float32) + b2

    return kernel


# ---------------------------------------------------------------------------
# Forward wrapper: hoisted weight prep + slab packing + single pallas_call
# ---------------------------------------------------------------------------
def tspn_forward(x, params, temperature):
    B, L, Cin = x.shape
    layer_num = len(params["sp_layers"])
    num_classes = params["clf"]["w2"].shape[0]

    # ---- effective weights, same op order as PyTorch forward ----
    w_sections, b_rows = [], []
    for p in params["sp_layers"]:
        w_main = jax.nn.softmax(p["w"] / temperature, axis=0) * p["mask"]  # (Cout, Cin)
        w_skip = p["ws"] * p["mask_s"]                                     # (Cout, Cin)
        w_sections.append(jnp.concatenate([w_main, w_skip], axis=0).T)    # (Cin, 2*Cout)
        b_rows.append(jnp.concatenate([p["b"], p["bs"]]))                  # (2*Cout,)

    fe = params["fe"]
    w_sections.append((fe["w"] * fe["mask"]).T)          # (C, C)
    b_rows.append(fe["b"])                               # (C,)
    b_rows.append(fe["gamma"])                           # (2C,)
    b_rows.append(fe["beta"])                            # (2C,)

    clf = params["clf"]
    w_sections.append(clf["w1"].T)                       # (2C, 128)
    b_rows.append(clf["b1"])                             # (128,)
    w_sections.append(clf["w2"].T)                       # (128, nc)
    b_rows.append(clf["b2"])                             # (nc,)

    # ---- pack all weights into one (rows, 128) slab (one DMA) ----
    w_shapes = [tuple(a.shape) for a in w_sections]
    w_offsets, padded, r = [], [], 0
    for a in w_sections:
        h, w = a.shape
        hp = -(-h // 8) * 8
        padded.append(jnp.pad(a, ((0, hp - h), (0, LANE - w))))
        w_offsets.append(r)
        r += hp
    w_slab = jnp.concatenate(padded, axis=0)             # (R, 128)

    # ---- pack all bias / BN vectors into one (8, 128) slab (one DMA) ----
    b_widths = [int(v.shape[0]) for v in b_rows]
    b_slab = jnp.concatenate(
        [jnp.pad(v, (0, LANE - v.shape[0]))[None, :] for v in b_rows], axis=0)
    nb_pad = -(-b_slab.shape[0] // 8) * 8
    b_slab = jnp.pad(b_slab, ((0, nb_pad - b_slab.shape[0]), (0, 0)))

    # TODO(synk): for large B, decouple BatchNorm+classifier from this kernel
    # and add a "parallel" grid axis over batches to engage the 2nd TensorCore
    # on v7x; not worthwhile at B=2.
    return pl.pallas_call(
        make_tspn_kernel(B, L, layer_num, w_offsets, w_shapes, b_widths),
        out_shape=jax.ShapeDtypeStruct((B, num_classes), jnp.float32),
        in_specs=[_VMEM, _VMEM, _VMEM],
        out_specs=_VMEM,
    )(x.reshape(B * L, Cin), w_slab, b_slab)


# ---------------------------------------------------------------------------
# Deterministic parameter construction (shapes as in the PyTorch __init__)
# ---------------------------------------------------------------------------
def init_linear(key, out_f, in_f):
    k1, k2 = jax.random.split(key)
    bound = 1.0 / math.sqrt(in_f)   # kaiming_uniform(a=sqrt(5)) == U(-1/sqrt(fan_in), .)
    w = jax.random.uniform(k1, (out_f, in_f), jnp.float32, -bound, bound)
    b = jax.random.uniform(k2, (out_f,), jnp.float32, -bound, bound)
    return w, b


def make_mask(key, shape, sparsity=0.9):
    r = jax.random.uniform(key, shape, jnp.float32)
    thr = jnp.quantile(r, sparsity)
    return (r > thr).astype(jnp.float32)


def build_params(key, in_channels, channel, num_classes, layer_num, len_feature):
    params = {"sp_layers": []}
    cin = in_channels
    for _ in range(layer_num):
        key, k1, k2, k3, k4 = jax.random.split(key, 5)
        w, b = init_linear(k1, channel, cin)
        ws, bs = init_linear(k2, channel, cin)
        params["sp_layers"].append({
            "w": w, "b": b, "mask": make_mask(k3, (channel, cin)),
            "ws": ws, "bs": bs, "mask_s": make_mask(k4, (channel, cin)),
        })
        cin = channel

    key, k1, k2 = jax.random.split(key, 3)
    fw, fb = init_linear(k1, channel, channel)
    params["fe"] = {
        "w": fw, "b": fb, "mask": make_mask(k2, (channel, channel)),
        "gamma": jnp.ones((len_feature * channel,), jnp.float32),
        "beta": jnp.zeros((len_feature * channel,), jnp.float32),
    }

    key, k1, k2 = jax.random.split(key, 3)
    w1, b1 = init_linear(k1, 128, len_feature * channel)
    w2, b2 = init_linear(k2, num_classes, 128)
    params["clf"] = {"w1": w1, "b1": b1, "w2": w2, "b2": b2}
    return params


if __name__ == "__main__":
    # args: in_channels=4, out_channels=4, scale=2, skip_connection=True,
    #       temperature=0.1, num_classes=3; 2 signal-processing layers,
    #       2 modules per layer, 2 feature-extractor modules.
    B, L = 2, 16
    in_channels, out_channels, scale = 4, 4, 2
    channel = int(out_channels * scale)          # 8
    num_classes = 3
    layer_num = 2
    len_feature = 2                              # [mean, max]
    temperature = 0.1

    key = jax.random.PRNGKey(0)
    kx, kp = jax.random.split(key)
    x = jax.random.normal(kx, (B, L, in_channels), dtype=jnp.float32)
    params = build_params(kp, in_channels, channel, num_classes, layer_num, len_feature)

    fwd = jax.jit(tspn_forward)
    out = jax.block_until_ready(fwd(x, params, temperature))

    assert out.shape == (B, num_classes), out.shape
    assert bool(jnp.all(jnp.isfinite(out)))
    print("KERNEL_OK")
</pallas_src>

<mosaic_0001>
module attributes {stable_mosaic.version = 11 : i64} {
  func.func @kernel(%arg0: memref<32x4xf32, #tpu.memory_space<vmem>>, %arg1: memref<168x128xf32, #tpu.memory_space<vmem>>, %arg2: memref<8x128xf32, #tpu.memory_space<vmem>>, %arg3: memref<2x3xf32, #tpu.memory_space<vmem>>) attributes {dimension_semantics = [], scalar_prefetch = 0 : i64, scratch_operands = 0 : i64, tpu.core_type = #tpu.core_type<tc>} {
    %c0 = arith.constant 0 : index
    %c0_0 = arith.constant 0 : index
    %0 = vector.load %arg0[%c0, %c0_0] : memref<32x4xf32, #tpu.memory_space<vmem>>, vector<32x4xf32>
    %1 = tpu.iota {dimensions = array<i32: 1>} : vector<32x8xi32>
    %c4_i32 = arith.constant 4 : i32
    %2 = vector.broadcast %c4_i32 : i32 to vector<32x8xi32>
    %3 = arith.cmpi slt, %1, %2 : vector<32x8xi32>
    %c0_1 = arith.constant 0 : index
    %c0_2 = arith.constant 0 : index
    %4 = vector.load %arg1[%c0_1, %c0_2] : memref<168x128xf32, #tpu.memory_space<vmem>>, vector<4x16xf32>
    %c0_3 = arith.constant 0 : index
    %c0_4 = arith.constant 0 : index
    %5 = vector.load %arg2[%c0_3, %c0_4] : memref<8x128xf32, #tpu.memory_space<vmem>>, vector<1x16xf32>
    %6 = vector.shape_cast %0 : vector<32x4xf32> to vector<2x16x4xf32>
    %cst = arith.constant dense<0.000000e+00> : vector<2x4xf32>
    %7 = vector.multi_reduction <add>, %6, %cst [1] : vector<2x16x4xf32> to vector<2x4xf32>
    %8 = vector.shape_cast %7 : vector<2x4xf32> to vector<2x1x4xf32>
    %cst_5 = arith.constant 1.600000e+01 : f32
    %9 = vector.broadcast %cst_5 : f32 to vector<2x1x4xf32>
    %10 = arith.divf %8, %9 : vector<2x1x4xf32>
    %11 = vector.broadcast %10 : vector<2x1x4xf32> to vector<2x16x4xf32>
    %12 = arith.subf %6, %11 : vector<2x16x4xf32>
    %13 = arith.mulf %12, %12 : vector<2x16x4xf32>
    %cst_6 = arith.constant dense<0.000000e+00> : vector<2x4xf32>
    %14 = vector.multi_reduction <add>, %13, %cst_6 [1] : vector<2x16x4xf32> to vector<2x4xf32>
    %15 = vector.shape_cast %14 : vector<2x4xf32> to vector<2x1x4xf32>
    %cst_7 = arith.constant 1.600000e+01 : f32
    %16 = vector.broadcast %cst_7 : f32 to vector<2x1x4xf32>
    %17 = arith.divf %15, %16 : vector<2x1x4xf32>
    %18 = vector.broadcast %10 : vector<2x1x4xf32> to vector<2x16x4xf32>
    %19 = arith.subf %6, %18 : vector<2x16x4xf32>
    %cst_8 = arith.constant 9.99999974E-6 : f32
    %20 = vector.broadcast %cst_8 : f32 to vector<2x1x4xf32>
    %21 = arith.addf %17, %20 : vector<2x1x4xf32>
    %22 = math.rsqrt %21 : vector<2x1x4xf32>
    %23 = vector.broadcast %22 : vector<2x1x4xf32> to vector<2x16x4xf32>
    %24 = arith.mulf %19, %23 : vector<2x16x4xf32>
    %25 = vector.shape_cast %24 : vector<2x16x4xf32> to vector<32x4xf32>
    %cst_9 = arith.constant dense<0.000000e+00> : vector<32x16xf32>
    %26 = tpu.matmul %25, %4, %cst_9 {dimension_numbers = #tpu.dot_dimension_numbers<[1], [0], [0], [1], [0, 0, 1, 1], [], []>} : vector<32x4xf32>, vector<4x16xf32>, vector<32x16xf32> -> vector<32x16xf32>
    %27 = vector.broadcast %5 : vector<1x16xf32> to vector<32x16xf32>
    %28 = arith.addf %26, %27 : vector<32x16xf32>
    %29 = vector.extract_strided_slice %28 {offsets = [0, 0], sizes = [32, 8], strides = [1, 1]} : vector<32x16xf32> to vector<32x8xf32>
    %30 = vector.extract_strided_slice %28 {offsets = [0, 8], sizes = [32, 8], strides = [1, 1]} : vector<32x16xf32> to vector<32x8xf32>
    %31 = math.absf %29 : vector<32x8xf32>
    %32 = arith.mulf %29, %29 : vector<32x8xf32>
    %33 = arith.select %3, %31, %32 : vector<32x8xi1>, vector<32x8xf32>
    %34 = arith.addf %33, %30 : vector<32x8xf32>
    %c8 = arith.constant 8 : index
    %c0_10 = arith.constant 0 : index
    %35 = vector.load %arg1[%c8, %c0_10] : memref<168x128xf32, #tpu.memory_space<vmem>>, vector<8x16xf32>
    %c1 = arith.constant 1 : index
    %c0_11 = arith.constant 0 : index
    %36 = vector.load %arg2[%c1, %c0_11] : memref<8x128xf32, #tpu.memory_space<vmem>>, vector<1x16xf32>
    %37 = vector.shape_cast %34 : vector<32x8xf32> to vector<2x16x8xf32>
    %cst_12 = arith.constant dense<0.000000e+00> : vector<2x8xf32>
    %38 = vector.multi_reduction <add>, %37, %cst_12 [1] : vector<2x16x8xf32> to vector<2x8xf32>
    %39 = vector.shape_cast %38 : vector<2x8xf32> to vector<2x1x8xf32>
    %cst_13 = arith.constant 1.600000e+01 : f32
    %40 = vector.broadcast %cst_13 : f32 to vector<2x1x8xf32>
    %41 = arith.divf %39, %40 : vector<2x1x8xf32>
    %42 = vector.broadcast %41 : vector<2x1x8xf32> to vector<2x16x8xf32>
    %43 = arith.subf %37, %42 : vector<2x16x8xf32>
    %44 = arith.mulf %43, %43 : vector<2x16x8xf32>
    %cst_14 = arith.constant dense<0.000000e+00> : vector<2x8xf32>
    %45 = vector.multi_reduction <add>, %44, %cst_14 [1] : vector<2x16x8xf32> to vector<2x8xf32>
    %46 = vector.shape_cast %45 : vector<2x8xf32> to vector<2x1x8xf32>
    %cst_15 = arith.constant 1.600000e+01 : f32
    %47 = vector.broadcast %cst_15 : f32 to vector<2x1x8xf32>
    %48 = arith.divf %46, %47 : vector<2x1x8xf32>
    %49 = vector.broadcast %41 : vector<2x1x8xf32> to vector<2x16x8xf32>
    %50 = arith.subf %37, %49 : vector<2x16x8xf32>
    %cst_16 = arith.constant 9.99999974E-6 : f32
    %51 = vector.broadcast %cst_16 : f32 to vector<2x1x8xf32>
    %52 = arith.addf %48, %51 : vector<2x1x8xf32>
    %53 = math.rsqrt %52 : vector<2x1x8xf32>
    %54 = vector.broadcast %53 : vector<2x1x8xf32> to vector<2x16x8xf32>
    %55 = arith.mulf %50, %54 : vector<2x16x8xf32>
    %56 = vector.shape_cast %55 : vector<2x16x8xf32> to vector<32x8xf32>
    %cst_17 = arith.constant dense<0.000000e+00> : vector<32x16xf32>
    %57 = tpu.matmul %56, %35, %cst_17 {dimension_numbers = #tpu.dot_dimension_numbers<[1], [0], [0], [1], [0, 0, 1, 1], [], []>} : vector<32x8xf32>, vector<8x16xf32>, vector<32x16xf32> -> vector<32x16xf32>
    %58 = vector.broadcast %36 : vector<1x16xf32> to vector<32x16xf32>
    %59 = arith.addf %57, %58 : vector<32x16xf32>
    %60 = vector.extract_strided_slice %59 {offsets = [0, 0], sizes = [32, 8], strides = [1, 1]} : vector<32x16xf32> to vector<32x8xf32>
    %61 = vector.extract_strided_slice %59 {offsets = [0, 8], sizes = [32, 8], strides = [1, 1]} : vector<32x16xf32> to vector<32x8xf32>
    %62 = math.absf %60 : vector<32x8xf32>
    %63 = arith.mulf %60, %60 : vector<32x8xf32>
    %64 = arith.select %3, %62, %63 : vector<32x8xi1>, vector<32x8xf32>
    %65 = arith.addf %64, %61 : vector<32x8xf32>
    %c16 = arith.constant 16 : index
    %c0_18 = arith.constant 0 : index
    %66 = vector.load %arg1[%c16, %c0_18] : memref<168x128xf32, #tpu.memory_space<vmem>>, vector<8x8xf32>
    %c2 = arith.constant 2 : index
    %c0_19 = arith.constant 0 : index
    %67 = vector.load %arg2[%c2, %c0_19] : memref<8x128xf32, #tpu.memory_space<vmem>>, vector<1x8xf32>
    %68 = vector.shape_cast %65 : vector<32x8xf32> to vector<2x16x8xf32>
    %cst_20 = arith.constant dense<0.000000e+00> : vector<2x8xf32>
    %69 = vector.multi_reduction <add>, %68, %cst_20 [1] : vector<2x16x8xf32> to vector<2x8xf32>
    %70 = vector.shape_cast %69 : vector<2x8xf32> to vector<2x1x8xf32>
    %cst_21 = arith.constant 1.600000e+01 : f32
    %71 = vector.broadcast %cst_21 : f32 to vector<2x1x8xf32>
    %72 = arith.divf %70, %71 : vector<2x1x8xf32>
    %73 = vector.broadcast %72 : vector<2x1x8xf32> to vector<2x16x8xf32>
    %74 = arith.subf %68, %73 : vector<2x16x8xf32>
    %75 = arith.mulf %74, %74 : vector<2x16x8xf32>
    %cst_22 = arith.constant dense<0.000000e+00> : vector<2x8xf32>
    %76 = vector.multi_reduction <add>, %75, %cst_22 [1] : vector<2x16x8xf32> to vector<2x8xf32>
    %77 = vector.shape_cast %76 : vector<2x8xf32> to vector<2x1x8xf32>
    %cst_23 = arith.constant 1.600000e+01 : f32
    %78 = vector.broadcast %cst_23 : f32 to vector<2x1x8xf32>
    %79 = arith.divf %77, %78 : vector<2x1x8xf32>
    %80 = vector.broadcast %72 : vector<2x1x8xf32> to vector<2x16x8xf32>
    %81 = arith.subf %68, %80 : vector<2x16x8xf32>
    %cst_24 = arith.constant 9.99999974E-6 : f32
    %82 = vector.broadcast %cst_24 : f32 to vector<2x1x8xf32>
    %83 = arith.addf %79, %82 : vector<2x1x8xf32>
    %84 = math.rsqrt %83 : vector<2x1x8xf32>
    %85 = vector.broadcast %84 : vector<2x1x8xf32> to vector<2x16x8xf32>
    %86 = arith.mulf %81, %85 : vector<2x16x8xf32>
    %87 = vector.shape_cast %86 : vector<2x16x8xf32> to vector<32x8xf32>
    %cst_25 = arith.constant dense<0.000000e+00> : vector<32x8xf32>
    %88 = tpu.matmul %87, %66, %cst_25 {dimension_numbers = #tpu.dot_dimension_numbers<[1], [0], [0], [1], [0, 0, 1, 1], [], []>} : vector<32x8xf32>, vector<8x8xf32>, vector<32x8xf32> -> vector<32x8xf32>
    %89 = vector.broadcast %67 : vector<1x8xf32> to vector<32x8xf32>
    %90 = arith.addf %88, %89 : vector<32x8xf32>
    %91 = vector.shape_cast %90 : vector<32x8xf32> to vector<2x16x8xf32>
    %cst_26 = arith.constant dense<0.000000e+00> : vector<2x8xf32>
    %92 = vector.multi_reduction <add>, %91, %cst_26 [1] : vector<2x16x8xf32> to vector<2x8xf32>
    %cst_27 = arith.constant 1.600000e+01 : f32
    %93 = vector.broadcast %cst_27 : f32 to vector<2x8xf32>
    %94 = arith.divf %92, %93 : vector<2x8xf32>
    %cst_28 = arith.constant dense<0xFF800000> : vector<2x8xf32>
    %95 = vector.multi_reduction <maximumf>, %91, %cst_28 [1] : vector<2x16x8xf32> to vector<2x8xf32>
    %96 = tpu.concatenate %94, %95 in 1 : vector<2x8xf32>, vector<2x8xf32> -> vector<2x16xf32>
    %c3 = arith.constant 3 : index
    %c0_29 = arith.constant 0 : index
    %97 = vector.load %arg2[%c3, %c0_29] : memref<8x128xf32, #tpu.memory_space<vmem>>, vector<1x16xf32>
    %c4 = arith.constant 4 : index
    %c0_30 = arith.constant 0 : index
    %98 = vector.load %arg2[%c4, %c0_30] : memref<8x128xf32, #tpu.memory_space<vmem>>, vector<1x16xf32>
    %cst_31 = arith.constant dense<0.000000e+00> : vector<16xf32>
    %99 = vector.multi_reduction <add>, %96, %cst_31 [0] : vector<2x16xf32> to vector<16xf32>
    %100 = vector.shape_cast %99 : vector<16xf32> to vector<1x16xf32>
    %cst_32 = arith.constant 2.000000e+00 : f32
    %101 = vector.broadcast %cst_32 : f32 to vector<1x16xf32>
    %102 = arith.divf %100, %101 : vector<1x16xf32>
    %103 = vector.broadcast %102 : vector<1x16xf32> to vector<2x16xf32>
    %104 = arith.subf %96, %103 : vector<2x16xf32>
    %105 = arith.mulf %104, %104 : vector<2x16xf32>
    %cst_33 = arith.constant dense<0.000000e+00> : vector<16xf32>
    %106 = vector.multi_reduction <add>, %105, %cst_33 [0] : vector<2x16xf32> to vector<16xf32>
    %107 = vector.shape_cast %106 : vector<16xf32> to vector<1x16xf32>
    %cst_34 = arith.constant 2.000000e+00 : f32
    %108 = vector.broadcast %cst_34 : f32 to vector<1x16xf32>
    %109 = arith.divf %107, %108 : vector<1x16xf32>
    %110 = vector.broadcast %102 : vector<1x16xf32> to vector<2x16xf32>
    %111 = arith.subf %96, %110 : vector<2x16xf32>
    %cst_35 = arith.constant 9.99999974E-6 : f32
    %112 = vector.broadcast %cst_35 : f32 to vector<1x16xf32>
    %113 = arith.addf %109, %112 : vector<1x16xf32>
    %114 = math.rsqrt %113 : vector<1x16xf32>
    %115 = vector.broadcast %114 : vector<1x16xf32> to vector<2x16xf32>
    %116 = arith.mulf %111, %115 : vector<2x16xf32>
    %117 = vector.broadcast %97 : vector<1x16xf32> to vector<2x16xf32>
    %118 = arith.mulf %116, %117 : vector<2x16xf32>
    %119 = vector.broadcast %98 : vector<1x16xf32> to vector<2x16xf32>
    %120 = arith.addf %118, %119 : vector<2x16xf32>
    %c24 = arith.constant 24 : index
    %c0_36 = arith.constant 0 : index
    %121 = vector.load %arg1[%c24, %c0_36] : memref<168x128xf32, #tpu.memory_space<vmem>>, vector<16x128xf32>
    %c5 = arith.constant 5 : index
    %c0_37 = arith.constant 0 : index
    %122 = vector.load %arg2[%c5, %c0_37] : memref<8x128xf32, #tpu.memory_space<vmem>>, vector<1x128xf32>
    %c40 = arith.constant 40 : index
    %c0_38 = arith.constant 0 : index
    %123 = vector.load %arg1[%c40, %c0_38] : memref<168x128xf32, #tpu.memory_space<vmem>>, vector<128x3xf32>
    %c6 = arith.constant 6 : index
    %c0_39 = arith.constant 0 : index
    %124 = vector.load %arg2[%c6, %c0_39] : memref<8x128xf32, #tpu.memory_space<vmem>>, vector<1x3xf32>
    %cst_40 = arith.constant dense<0.000000e+00> : vector<2x128xf32>
    %125 = tpu.matmul %120, %121, %cst_40 {dimension_numbers = #tpu.dot_dimension_numbers<[1], [0], [0], [1], [0, 0, 1, 1], [], []>} : vector<2x16xf32>, vector<16x128xf32>, vector<2x128xf32> -> vector<2x128xf32>
    %126 = vector.broadcast %122 : vector<1x128xf32> to vector<2x128xf32>
    %127 = arith.addf %125, %126 : vector<2x128xf32>
    %cst_41 = arith.constant 0.000000e+00 : f32
    %128 = vector.broadcast %cst_41 : f32 to vector<2x128xf32>
    %129 = arith.maximumf %127, %128 : vector<2x128xf32>
    %cst_42 = arith.constant dense<0.000000e+00> : vector<2x3xf32>
    %130 = tpu.matmul %129, %123, %cst_42 {dimension_numbers = #tpu.dot_dimension_numbers<[1], [0], [0], [1], [0, 0, 1, 1], [], []>} : vector<2x128xf32>, vector<128x3xf32>, vector<2x3xf32> -> vector<2x3xf32>
    %131 = vector.broadcast %124 : vector<1x3xf32> to vector<2x3xf32>
    %132 = arith.addf %130, %131 : vector<2x3xf32>
    %c0_43 = arith.constant 0 : index
    %c0_44 = arith.constant 0 : index
    %133 = vector.load %arg3[%c0_43, %c0_44] : memref<2x3xf32, #tpu.memory_space<vmem>>, vector<2x3xf32>
    tpu.vector_store %arg3[%c0_43, %c0_44], %132 {strides = array<i32>} : memref<2x3xf32, #tpu.memory_space<vmem>>, vector<2x3xf32>,
    return
  }
}

</mosaic_0001>

<bundles_post_ra>
// kernel: mul.8
= control target key start
LH: loop header
LB: loop body
LE: loop exit
PB: predicated region body
PF: predicated region fallthrough
CT: control target
= control target key end

     0   :  { %s34_s0 = inlined_call_operand.vmem [shape: f32[8,8], index: 0, kind: input, shape index: {}]   ;;  %s35_s1 = inlined_call_operand.vmem [shape: f32[8,8], index: 1, kind: input, shape index: {}]   ;;  %s36_s2 = inlined_call_operand.vmem [shape: f32[8,8], index: 2, kind: output, shape index: {}]  }
   0x1   :  { %v3_v0 = vld [vmem:[%s34_s0] sm:$0xff] }
   0x2   :  { %v4_v1 = vld [vmem:[%s35_s1] sm:$0xff] }
   0x3   :  { %v7_v2 = vmul.f32 %v4_v1, %v3_v0 }
   0x5   :  { %9 = vst [vmem:[%s36_s2] sm:$0xff] %v7_v2 }

// kernel: mul.6
= control target key start
LH: loop header
LB: loop body
LE: loop exit
PB: predicated region body
PF: predicated region fallthrough
CT: control target
= control target key end

     0   :  { %s34_s0 = inlined_call_operand.vmem [shape: f32[8,4], index: 0, kind: input, shape index: {}]   ;;  %s35_s1 = inlined_call_operand.vmem [shape: f32[8,4], index: 1, kind: input, shape index: {}]   ;;  %s36_s2 = inlined_call_operand.vmem [shape: f32[8,4], index: 2, kind: output, shape index: {}]  }
   0x1   :  { %v3_v0 = vld [vmem:[%s34_s0] sm:$0xf] }
   0x2   :  { %v4_v1 = vld [vmem:[%s35_s1] sm:$0xf] }
   0x3   :  { %v7_v2 = vmul.f32 %v4_v1, %v3_v0 }
   0x5   :  { %9 = vst [vmem:[%s36_s2] sm:$0xf] %v7_v2 }

// kernel: tspn_forward.1
= control target key start
LH: loop header
LB: loop body
LE: loop exit
PB: predicated region body
PF: predicated region fallthrough
CT: control target
= control target key end

     0   :  { %vm119_vm0 = vcmask 1043456   ;;  %vm24_vm1 = vcmask 31744   ;;  %v702_v8 = vmov 16.0   ;;  %s916_s0 = inlined_call_operand.vmem [shape: f32[32,4], index: 0, kind: input, shape index: {}]   ;;  %s917_s1 = inlined_call_operand.vmem [shape: f32[168,128], index: 1, kind: input, shape index: {}]   ;;  %s918_s2 = inlined_call_operand.vmem [shape: f32[8,128], index: 2, kind: input, shape index: {}]   ;;  %s919_s3 = inlined_call_operand.hbm [shape: f32[2,3], index: 3, kind: output, shape index: {}]  }
   0x1   :  { %v22_v0 = vld [vmem:[%s917_s1] sm:$0xf]  ;;  %v16_v2 = vld [vmem:[%s916_s0 + $0x8] sm:$0xff]  ;;  %v17_v5 = vld [vmem:[%s916_s0 + $0x10] sm:$0xff]  ;;  %658 = vrcp.f32 %v702_v8 }
   0x2   :  { %v15_v1 = vld [vmem:[%s916_s0] sm:$0xff]  ;;  %632 = vmatpush.msk.msra.mxu0 %vm119_vm0, %v22_v0  ;;  %v26_v4 = vsel %vm24_vm1, %v16_v2, 0.0  ;;  %v18_v6 = vld [vmem:[%s916_s0 + $0x18] sm:$0xff]  ;;  %v34_v9 = vsel %vm24_vm1, %v17_v5, 0.0 }
   0x3   :  { %v25_v3 = vsel %vm24_vm1, %v15_v1, 0.0  ;;  %v35_v10 = vsel %vm24_vm1, %v18_v6, 0.0 }
   0x4   :  { %v27_v7 = vadd.f32 %v26_v4, %v25_v3  ;;  %v36_v11 = vadd.f32 %v35_v10, %v34_v9 }
   0x6   :  { %v28_v12 = vrot.slane %v27_v7, 4  ;;  %v37_v13 = vrot.slane %v36_v11, 4 }
   0x7   :  { %8 = vsyncpa [#allocation3], 0  ;;  %v659_v16 = vpop.eup %658  ;;  %s703_s23 = smov 120   ;;  %vm186_vm10 = vcmask 64512   ;;  %s704_s5 = smov 8  }
   0x8   :  { %v29_v14 = vadd.f32 %v28_v12, %v27_v7  ;;  %v38_v15 = vadd.f32 %v37_v13, %v36_v11  ;;  %v44_v18 = vmul.f32 16.0, %v659_v16  ;;  %vm48_vm2 = vweird.f32 %v659_v16  ;;  %s706_s0 = smov [#allocation2]   ;;  %s623_s25 = sshll.u32 %s919_s3, 4  ;;  %s624_s25 = int_to_ptr.hbm [resolvable:$true] %s623_s25 }
   0x9   :  { %s621_s22 = sshll.u32 %s706_s0, 4  ;;  %s622_s22 = int_to_ptr.vmem [resolvable:$true] %s621_s22 }
   0xa   :  { %v30_v17 = vrot.slane %v29_v14, 2  ;;  %v39_v19 = vrot.slane %v38_v15, 2  ;;  %v45_v21 = vsub.f32 1.0, %v44_v18 }
   0xc   :  { %v31_v20 = vadd.f32 %v30_v17, %v29_v14  ;;  %v40_v22 = vadd.f32 %v39_v19, %v38_v15  ;;  %v46_v24 = vmul.f32 %v659_v16, %v45_v21 }
   0xe   :  { %v32_v23 = vrot.slane %v31_v20, 1  ;;  %v41_v25 = vrot.slane %v40_v22, 1  ;;  %v47_v27 = vadd.f32 %v659_v16, %v46_v24 }
  0x10   :  { %v33_v26 = vadd.f32 %v32_v23, %v31_v20  ;;  %v42_v28 = vadd.f32 %v41_v25, %v40_v22  ;;  %v746_v29 = vsel %vm48_vm2, %v659_v16, %v47_v27  ;;  %v651_v16 = vld [vmem:[%s918_s2] ss:$0 sm:$0xff]  ;;  %v19_v25 = vlaneseq }
  0x12   :  { %v50_v30 = vmul.f32 %v746_v29, %v33_v26  ;;  %v51_v31 = vmul.f32 %v746_v29, %v42_v28  ;;  %v767_v26 = vand.u32 127, %v19_v25 }
  0x14   :  { %v52_v32 = vsub.f32 %v15_v1, %v50_v30  ;;  %v53_v33 = vsub.f32 %v16_v2, %v50_v30  ;;  %v54_v34 = vsub.f32 %v17_v5, %v51_v31  ;;  %v55_v35 = vsub.f32 %v18_v6, %v51_v31 }
  0x15   :  { %vm21_vm9 = vcmp.lt.s32.totalorder %v767_v26, 4 }
  0x16   :  { %v56_v36 = vmul.f32 %v52_v32, %v52_v32  ;;  %v57_v37 = vmul.f32 %v53_v33, %v53_v33  ;;  %v58_v38 = vmul.f32 %v54_v34, %v54_v34  ;;  %v59_v39 = vmul.f32 %v55_v35, %v55_v35 }
  0x18   :  { %v60_v40 = vsel %vm24_vm1, %v56_v36, 0.0  ;;  %v61_v41 = vsel %vm24_vm1, %v57_v37, 0.0  ;;  %v69_v42 = vsel %vm24_vm1, %v58_v38, 0.0  ;;  %v70_v43 = vsel %vm24_vm1, %v59_v39, 0.0 }
  0x19   :  { %v62_v44 = vadd.f32 %v61_v41, %v60_v40  ;;  %v71_v45 = vadd.f32 %v70_v43, %v69_v42 }
  0x1b   :  { %v63_v46 = vrot.slane %v62_v44, 4  ;;  %v72_v47 = vrot.slane %v71_v45, 4 }
  0x1d   :  { %v64_v48 = vadd.f32 %v63_v46, %v62_v44  ;;  %v73_v49 = vadd.f32 %v72_v47, %v71_v45  ;;  %v184_v44 = vld [vmem:[%s917_s1 + $0x8] sm:$0xff] }
  0x1e   :  { %289 = vmatpush.msra.mxu1 %v184_v44 }
  0x1f   :  { %v65_v50 = vrot.slane %v64_v48, 2  ;;  %v74_v51 = vrot.slane %v73_v49, 2 }
  0x21   :  { %v66_v52 = vadd.f32 %v65_v50, %v64_v48  ;;  %v75_v53 = vadd.f32 %v74_v51, %v73_v49 }
  0x23   :  { %v67_v54 = vrot.slane %v66_v52, 1  ;;  %v76_v55 = vrot.slane %v75_v53, 1 }
  0x25   :  { %v68_v56 = vadd.f32 %v67_v54, %v66_v52  ;;  %v77_v57 = vadd.f32 %v76_v55, %v75_v53 }
  0x27   :  { %v78_v58 = vmul.f32 %v68_v56, %v746_v29  ;;  %v79_v59 = vmul.f32 %v77_v57, %v746_v29 }
  0x29   :  { %v80_v60 = vadd.f32 1e-05, %v78_v58  ;;  %v81_v61 = vadd.f32 1e-05, %v79_v59 }
  0x2b   :  { %660 = vrsqrt.f32 %v80_v60  ;;  %vm88_vm3 = vweird.f32 %v80_v60  ;;  %vm98_vm6 = vweird.f32 %v81_v61 }
  0x2c   :  { %662 = vrsqrt.f32 %v81_v61 }
  0x31   :  { %v661_v62 = vpop.eup %660 }
  0x32   :  { %v663_v63 = vpop.eup %662  ;;  %v83_v0 = vmul.f32 %v661_v62, %v80_v60  ;;  %vm89_vm4 = vweird.f32 %v661_v62 }
  0x33   :  { %v93_v2 = vmul.f32 %v663_v63, %v81_v61  ;;  %vm90_vm5 = vmor %vm88_vm3, %vm89_vm4  ;;  %vm99_vm7 = vweird.f32 %v663_v63 }
  0x34   :  { %v84_v1 = vmul.f32 %v661_v62, %v83_v0  ;;  %vm100_vm8 = vmor %vm98_vm6, %vm99_vm7  ;;  %vm493_vm7 = vcmask 1041409  }
  0x35   :  { %v94_v5 = vmul.f32 %v663_v63, %v93_v2 }
  0x36   :  { %v85_v3 = vmul.f32 0.5, %v84_v1 }
  0x37   :  { %v95_v8 = vmul.f32 0.5, %v94_v5 }
  0x38   :  { %v86_v4 = vsub.f32 1.5, %v85_v3 }
  0x39   :  { %v96_v10 = vsub.f32 1.5, %v95_v8 }
  0x3a   :  { %v87_v6 = vmul.f32 %v661_v62, %v86_v4 }
  0x3b   :  { %v97_v12 = vmul.f32 %v663_v63, %v96_v10 }
  0x3c   :  { %v91_v7 = vsel %vm90_vm5, %v661_v62, %v87_v6 }
  0x3d   :  { %v102_v9 = vmul.f32 %v91_v7, %v52_v32  ;;  %v103_v11 = vmul.f32 %v91_v7, %v53_v33  ;;  %v101_v13 = vsel %vm100_vm8, %v663_v63, %v97_v12  ;;  %vm505_vm8 = vcmask 123904  }
  0x3e   :  { %v104_v14 = vmul.f32 %v101_v13, %v54_v34  ;;  %v105_v15 = vmul.f32 %v101_v13, %v55_v35 }
  0x3f   :  { %633 = vmatmul.msk.f32.vlgmr.msra.gmra.mxu0 %vm24_vm1, %v102_v9 }
  0x47   :  { %634 = vmatmul.msk.f32.gmra.mxu0 %vm24_vm1, %v103_v11 }
  0x4f   :  { %635 = vmatmul.msk.f32.gmra.mxu0 %vm24_vm1, %v104_v14 }
  0x57   :  { %636 = vmatmul.msk.f32.gmra.mxu0 %vm24_vm1, %v105_v15 }
  0xbc   :  { %v140_v17 = vpop.f32.mrf.mxu0 }
  0xbd   :  { %v141_v18 = vadd.f32 %v651_v16, %v140_v17 }
  0xbf   :  { %168 = vrot.lane.b32.xlu0 %v141_v18, %s703_s23  ;;  %v152_v28 = vand.u32 2147483647, %v141_v18  ;;  %v156_v30 = vmul.f32 %v141_v18, %v141_v18 }
  0xc1   :  { %v160_v33 = vsel %vm21_vm9, %v152_v28, %v156_v30 }
  0xc4   :  { %v143_v19 = vpop.f32.mrf.mxu0 }
  0xc5   :  { %v144_v20 = vadd.f32 %v651_v16, %v143_v19 }
  0xc7   :  { %170 = vrot.lane.b32.xlu0 %v144_v20, %s703_s23  ;;  %v153_v31 = vand.u32 2147483647, %v144_v20  ;;  %v157_v32 = vmul.f32 %v144_v20, %v144_v20 }
  0xc9   :  { %v161_v35 = vsel %vm21_vm9, %v153_v31, %v157_v32 }
  0xcc   :  { %v146_v21 = vpop.f32.mrf.mxu0 }
  0xcd   :  { %v147_v22 = vadd.f32 %v651_v16, %v146_v21 }
  0xcf   :  { %172 = vrot.lane.b32.xlu1 %v147_v22, %s703_s23  ;;  %v154_v45 = vand.u32 2147483647, %v147_v22  ;;  %v158_v46 = vmul.f32 %v147_v22, %v147_v22 }
  0xd1   :  { %v162_v52 = vsel %vm21_vm9, %v154_v45, %v158_v46 }
  0xd4   :  { %v149_v23 = vpop.f32.mrf.mxu0 }
  0xd5   :  { %v150_v24 = vadd.f32 %v651_v16, %v149_v23 }
  0xd7   :  { %174 = vrot.lane.b32.xlu1 %v150_v24, %s703_s23  ;;  %v155_v48 = vand.u32 2147483647, %v150_v24  ;;  %v159_v49 = vmul.f32 %v150_v24, %v150_v24 }
  0xd9   :  { %v163_v55 = vsel %vm21_vm9, %v155_v48, %v159_v49 }
 0x131   :  { %v169_v27 = vpop.permute.xlu0 %168 }
 0x132   :  { %v180_v34 = vadd.f32 %v169_v27, %v160_v33 }
 0x134   :  { %v187_v38 = vsel %vm186_vm10, %v180_v34, 0.0 }
 0x139   :  { %v171_v36 = vpop.permute.xlu0 %170 }
 0x13a   :  { %v181_v37 = vadd.f32 %v171_v36, %v161_v35 }
 0x13c   :  { %v188_v39 = vsel %vm186_vm10, %v181_v37, 0.0 }
 0x13d   :  { %v189_v40 = vadd.f32 %v188_v39, %v187_v38 }
 0x13f   :  { %v190_v41 = vrot.slane %v189_v40, 4 }
 0x141   :  { %v191_v42 = vadd.f32 %v190_v41, %v189_v40  ;;  %v173_v43 = vpop.permute.xlu1 %172 }
 0x142   :  { %v182_v53 = vadd.f32 %v173_v43, %v162_v52 }
 0x143   :  { %v192_v47 = vrot.slane %v191_v42, 2 }
 0x144   :  { %v196_v59 = vsel %vm186_vm10, %v182_v53, 0.0 }
 0x145   :  { %v193_v50 = vadd.f32 %v192_v47, %v191_v42 }
 0x147   :  { %v194_v51 = vrot.slane %v193_v50, 1 }
 0x149   :  { %v195_v54 = vadd.f32 %v194_v51, %v193_v50  ;;  %v175_v56 = vpop.permute.xlu1 %174 }
 0x14a   :  { %v183_v57 = vadd.f32 %v175_v56, %v163_v55  ;;  %v652_v55 = vld [vmem:[%s918_s2 + $0x1] ss:$0 sm:$0xff] }
 0x14b   :  { %v205_v58 = vmul.f32 %v195_v54, %v746_v29 }
 0x14c   :  { %v197_v60 = vsel %vm186_vm10, %v183_v57, 0.0 }
 0x14d   :  { %v208_v61 = vsub.f32 %v181_v37, %v205_v58  ;;  %v198_v62 = vadd.f32 %v197_v60, %v196_v59  ;;  %v207_v63 = vsub.f32 %v180_v34, %v205_v58 }
 0x14f   :  { %v212_v0 = vmul.f32 %v208_v61, %v208_v61  ;;  %v199_v1 = vrot.slane %v198_v62, 4  ;;  %v211_v2 = vmul.f32 %v207_v63, %v207_v63 }
 0x151   :  { %v216_v3 = vsel %vm186_vm10, %v212_v0, 0.0  ;;  %v200_v4 = vadd.f32 %v199_v1, %v198_v62  ;;  %v215_v5 = vsel %vm186_vm10, %v211_v2, 0.0 }
 0x152   :  { %v217_v6 = vadd.f32 %v216_v3, %v215_v5 }
 0x153   :  { %v201_v7 = vrot.slane %v200_v4, 2 }
 0x154   :  { %v218_v8 = vrot.slane %v217_v6, 4 }
 0x155   :  { %v202_v9 = vadd.f32 %v201_v7, %v200_v4 }
 0x156   :  { %v219_v10 = vadd.f32 %v218_v8, %v217_v6 }
 0x157   :  { %v203_v11 = vrot.slane %v202_v9, 1 }
 0x158   :  { %v220_v12 = vrot.slane %v219_v10, 2 }
 0x159   :  { %v204_v13 = vadd.f32 %v203_v11, %v202_v9 }
 0x15a   :  { %v221_v14 = vadd.f32 %v220_v12, %v219_v10 }
 0x15b   :  { %v206_v15 = vmul.f32 %v204_v13, %v746_v29 }
 0x15c   :  { %v222_v16 = vrot.slane %v221_v14, 1 }
 0x15d   :  { %v210_v17 = vsub.f32 %v183_v57, %v206_v15  ;;  %v209_v18 = vsub.f32 %v182_v53, %v206_v15 }
 0x15e   :  { %v223_v19 = vadd.f32 %v222_v16, %v221_v14 }
 0x15f   :  { %v214_v20 = vmul.f32 %v210_v17, %v210_v17  ;;  %v213_v21 = vmul.f32 %v209_v18, %v209_v18 }
 0x160   :  { %v233_v22 = vmul.f32 %v223_v19, %v746_v29 }
 0x161   :  { %v225_v23 = vsel %vm186_vm10, %v214_v20, 0.0  ;;  %v224_v24 = vsel %vm186_vm10, %v213_v21, 0.0 }
 0x162   :  { %v235_v25 = vadd.f32 1e-05, %v233_v22  ;;  %v226_v27 = vadd.f32 %v225_v23, %v224_v24 }
 0x164   :  { %664 = vrsqrt.f32 %v235_v25  ;;  %v227_v28 = vrot.slane %v226_v27, 4  ;;  %vm243_vm12 = vweird.f32 %v235_v25 }
 0x166   :  { %v228_v30 = vadd.f32 %v227_v28, %v226_v27 }
 0x168   :  { %v229_v31 = vrot.slane %v228_v30, 2 }
 0x16a   :  { %v665_v32 = vpop.eup %664  ;;  %v230_v33 = vadd.f32 %v229_v31, %v228_v30  ;;  %v335_v30 = vld [vmem:[%s917_s1 + $0x10] sm:$0xff] }
 0x16b   :  { %v238_v34 = vmul.f32 %v665_v32, %v235_v25  ;;  %vm244_vm11 = vweird.f32 %v665_v32  ;;  %439 = vmatpush.msra.mxu2 %v335_v30 }
 0x16c   :  { %v231_v35 = vrot.slane %v230_v33, 1  ;;  %vm245_vm13 = vmor %vm243_vm12, %vm244_vm11 }
 0x16d   :  { %v239_v36 = vmul.f32 %v665_v32, %v238_v34 }
 0x16e   :  { %v232_v37 = vadd.f32 %v231_v35, %v230_v33 }
 0x16f   :  { %v240_v38 = vmul.f32 0.5, %v239_v36 }
 0x170   :  { %v234_v39 = vmul.f32 %v232_v37, %v746_v29 }
 0x171   :  { %v241_v40 = vsub.f32 1.5, %v240_v38 }
 0x172   :  { %v236_v41 = vadd.f32 1e-05, %v234_v39 }
 0x173   :  { %v242_v42 = vmul.f32 %v665_v32, %v241_v40 }
 0x174   :  { %666 = vrsqrt.f32 %v236_v41  ;;  %vm253_vm15 = vweird.f32 %v236_v41 }
 0x175   :  { %v246_v43 = vsel %vm245_vm13, %v665_v32, %v242_v42  ;;  %vm568_vm13 = vcmask 130048  }
 0x176   :  { %v257_v44 = vmul.f32 %v246_v43, %v207_v63  ;;  %v258_v45 = vmul.f32 %v246_v43, %v208_v61 }
 0x178   :  { %637 = vmatmul.msk.f32.vlgmr.msra.gmra.mxu1 %vm186_vm10, %v257_v44 }
 0x17a   :  { %v667_v46 = vpop.eup %666 }
 0x17b   :  { %v248_v47 = vmul.f32 %v667_v46, %v236_v41  ;;  %vm254_vm14 = vweird.f32 %v667_v46 }
 0x17c   :  { %vm255_vm0 = vmor %vm253_vm15, %vm254_vm14  ;;  %vm614_vm14 = vcmask 17408  }
 0x17d   :  { %v249_v48 = vmul.f32 %v667_v46, %v248_v47 }
 0x17f   :  { %v250_v49 = vmul.f32 0.5, %v249_v48 }
 0x180   :  { %638 = vmatmul.msk.f32.gmra.mxu1 %vm186_vm10, %v258_v45 }
 0x181   :  { %v251_v50 = vsub.f32 1.5, %v250_v49 }
 0x183   :  { %v252_v51 = vmul.f32 %v667_v46, %v251_v50 }
 0x185   :  { %v256_v52 = vsel %vm255_vm0, %v667_v46, %v252_v51 }
 0x186   :  { %v259_v53 = vmul.f32 %v256_v52, %v209_v18  ;;  %v260_v54 = vmul.f32 %v256_v52, %v210_v17 }
 0x188   :  { %639 = vmatmul.msk.f32.gmra.mxu1 %vm186_vm10, %v259_v53 }
 0x190   :  { %640 = vmatmul.msk.f32.gmra.mxu1 %vm186_vm10, %v260_v54 }
 0x1f5   :  { %v291_v56 = vpop.f32.mrf.mxu1 }
 0x1f6   :  { %v292_v57 = vadd.f32 %v652_v55, %v291_v56 }
 0x1f8   :  { %319 = vrot.lane.b32.xlu2 %v292_v57, %s703_s23  ;;  %v303_v1 = vand.u32 2147483647, %v292_v57  ;;  %v307_v2 = vmul.f32 %v292_v57, %v292_v57 }
 0x1fa   :  { %v311_v5 = vsel %vm21_vm9, %v303_v1, %v307_v2 }
 0x1fd   :  { %v294_v58 = vpop.f32.mrf.mxu1 }
 0x1fe   :  { %v295_v59 = vadd.f32 %v652_v55, %v294_v58 }
 0x200   :  { %321 = vrot.lane.b32.xlu2 %v295_v59, %s703_s23  ;;  %v304_v3 = vand.u32 2147483647, %v295_v59  ;;  %v308_v4 = vmul.f32 %v295_v59, %v295_v59 }
 0x202   :  { %v312_v7 = vsel %vm21_vm9, %v304_v3, %v308_v4 }
 0x205   :  { %v297_v60 = vpop.f32.mrf.mxu1 }
 0x206   :  { %v298_v61 = vadd.f32 %v652_v55, %v297_v60 }
 0x208   :  { %323 = vrot.lane.b32.xlu0 %v298_v61, %s703_s23  ;;  %v305_v34 = vand.u32 2147483647, %v298_v61  ;;  %v309_v35 = vmul.f32 %v298_v61, %v298_v61 }
 0x20a   :  { %v313_v41 = vsel %vm21_vm9, %v305_v34, %v309_v35 }
 0x20d   :  { %v300_v62 = vpop.f32.mrf.mxu1 }
 0x20e   :  { %v301_v63 = vadd.f32 %v652_v55, %v300_v62 }
 0x210   :  { %325 = vrot.lane.b32.xlu1 %v301_v63, %s703_s23  ;;  %v306_v37 = vand.u32 2147483647, %v301_v63  ;;  %v310_v38 = vmul.f32 %v301_v63, %v301_v63 }
 0x212   :  { %v314_v45 = vsel %vm21_vm9, %v306_v37, %v310_v38 }
 0x252   :  { %v320_v0 = vpop.permute.xlu2 %319 }
 0x253   :  { %v331_v6 = vadd.f32 %v320_v0, %v311_v5 }
 0x255   :  { %v337_v10 = vsel %vm186_vm10, %v331_v6, 0.0 }
 0x25a   :  { %v322_v8 = vpop.permute.xlu2 %321 }
 0x25b   :  { %v332_v9 = vadd.f32 %v322_v8, %v312_v7 }
 0x25d   :  { %v338_v11 = vsel %vm186_vm10, %v332_v9, 0.0 }
 0x25e   :  { %v339_v12 = vadd.f32 %v338_v11, %v337_v10 }
 0x260   :  { %v340_v13 = vrot.slane %v339_v12, 4 }
 0x262   :  { %v341_v14 = vadd.f32 %v340_v13, %v339_v12 }
 0x264   :  { %v342_v15 = vrot.slane %v341_v14, 2 }
 0x266   :  { %v343_v16 = vadd.f32 %v342_v15, %v341_v14 }
 0x268   :  { %v344_v17 = vrot.slane %v343_v16, 1 }
 0x26a   :  { %v345_v18 = vadd.f32 %v344_v17, %v343_v16 }
 0x26c   :  { %v355_v19 = vmul.f32 %v345_v18, %v746_v29 }
 0x26e   :  { %v358_v20 = vsub.f32 %v332_v9, %v355_v19  ;;  %v357_v21 = vsub.f32 %v331_v6, %v355_v19 }
 0x270   :  { %v362_v22 = vmul.f32 %v358_v20, %v358_v20  ;;  %v361_v23 = vmul.f32 %v357_v21, %v357_v21 }
 0x272   :  { %v366_v24 = vsel %vm186_vm10, %v362_v22, 0.0  ;;  %v365_v25 = vsel %vm186_vm10, %v361_v23, 0.0 }
 0x273   :  { %v367_v27 = vadd.f32 %v366_v24, %v365_v25 }
 0x275   :  { %v368_v28 = vrot.slane %v367_v27, 4 }
 0x277   :  { %v369_v31 = vadd.f32 %v368_v28, %v367_v27  ;;  %v653_v28 = vld [vmem:[%s918_s2 + $0x2] ss:$0 sm:$0xff] }
 0x279   :  { %v370_v32 = vrot.slane %v369_v31, 2 }
 0x27a   :  { %v324_v39 = vpop.permute.xlu0 %323 }
 0x27b   :  { %v371_v33 = vadd.f32 %v370_v32, %v369_v31  ;;  %v333_v42 = vadd.f32 %v324_v39, %v313_v41 }
 0x27d   :  { %v372_v36 = vrot.slane %v371_v33, 1  ;;  %v346_v48 = vsel %vm186_vm10, %v333_v42, 0.0 }
 0x27f   :  { %v373_v40 = vadd.f32 %v372_v36, %v371_v33 }
 0x281   :  { %v383_v43 = vmul.f32 %v373_v40, %v746_v29 }
 0x282   :  { %v326_v44 = vpop.permute.xlu1 %325 }
 0x283   :  { %v334_v46 = vadd.f32 %v326_v44, %v314_v45  ;;  %v385_v47 = vadd.f32 1e-05, %v383_v43 }
 0x285   :  { %v347_v49 = vsel %vm186_vm10, %v334_v46, 0.0  ;;  %668 = vrsqrt.f32 %v385_v47  ;;  %vm393_vm2 = vweird.f32 %v385_v47 }
 0x286   :  { %v348_v50 = vadd.f32 %v347_v49, %v346_v48 }
 0x288   :  { %v349_v51 = vrot.slane %v348_v50, 4 }
 0x28a   :  { %v350_v52 = vadd.f32 %v349_v51, %v348_v50 }
 0x28b   :  { %v669_v53 = vpop.eup %668 }
 0x28c   :  { %v351_v54 = vrot.slane %v350_v52, 2  ;;  %v388_v55 = vmul.f32 %v669_v53, %v385_v47  ;;  %vm394_vm1 = vweird.f32 %v669_v53 }
 0x28d   :  { %vm395_vm3 = vmor %vm393_vm2, %vm394_vm1 }
 0x28e   :  { %v352_v56 = vadd.f32 %v351_v54, %v350_v52  ;;  %v389_v57 = vmul.f32 %v669_v53, %v388_v55 }
 0x290   :  { %v353_v58 = vrot.slane %v352_v56, 1  ;;  %v390_v59 = vmul.f32 0.5, %v389_v57 }
 0x292   :  { %v354_v60 = vadd.f32 %v353_v58, %v352_v56  ;;  %v391_v26 = vsub.f32 1.5, %v390_v59 }
 0x294   :  { %v356_v61 = vmul.f32 %v354_v60, %v746_v29  ;;  %v392_v62 = vmul.f32 %v669_v53, %v391_v26 }
 0x296   :  { %v360_v63 = vsub.f32 %v334_v46, %v356_v61  ;;  %v396_v0 = vsel %vm395_vm3, %v669_v53, %v392_v62  ;;  %v359_v1 = vsub.f32 %v333_v42, %v356_v61 }
 0x297   :  { %v407_v2 = vmul.f32 %v396_v0, %v357_v21  ;;  %v408_v3 = vmul.f32 %v396_v0, %v358_v20 }
 0x298   :  { %v364_v4 = vmul.f32 %v360_v63, %v360_v63  ;;  %v363_v5 = vmul.f32 %v359_v1, %v359_v1 }
 0x299   :  { %641 = vmatmul.msk.f32.vlgmr.msra.gmra.mxu2 %vm186_vm10, %v407_v2 }
 0x29a   :  { %v375_v6 = vsel %vm186_vm10, %v364_v4, 0.0  ;;  %v374_v7 = vsel %vm186_vm10, %v363_v5, 0.0 }
 0x29b   :  { %v376_v8 = vadd.f32 %v375_v6, %v374_v7 }
 0x29d   :  { %v377_v9 = vrot.slane %v376_v8, 4 }
 0x29f   :  { %v378_v10 = vadd.f32 %v377_v9, %v376_v8 }
 0x2a1   :  { %642 = vmatmul.msk.f32.gmra.mxu2 %vm186_vm10, %v408_v3  ;;  %v379_v11 = vrot.slane %v378_v10, 2 }
 0x2a3   :  { %v380_v12 = vadd.f32 %v379_v11, %v378_v10 }
 0x2a5   :  { %v381_v13 = vrot.slane %v380_v12, 1 }
 0x2a7   :  { %v382_v14 = vadd.f32 %v381_v13, %v380_v12  ;;  %v705_v12 = vmov 2.0  }
 0x2a9   :  { %v384_v15 = vmul.f32 %v382_v14, %v746_v29 }
 0x2ab   :  { %v386_v16 = vadd.f32 1e-05, %v384_v15 }
 0x2ad   :  { %670 = vrsqrt.f32 %v386_v16  ;;  %vm403_vm5 = vweird.f32 %v386_v16 }
 0x2ae   :  { %672 = vrcp.f32 %v705_v12 }
 0x2b3   :  { %v671_v17 = vpop.eup %670 }
 0x2b4   :  { %v398_v18 = vmul.f32 %v671_v17, %v386_v16  ;;  %vm404_vm4 = vweird.f32 %v671_v17  ;;  %v673_v13 = vpop.eup %672 }
 0x2b5   :  { %vm405_vm6 = vmor %vm403_vm5, %vm404_vm4  ;;  %v514_v14 = vmul.f32 2.0, %v673_v13  ;;  %vm518_vm9 = vweird.f32 %v673_v13 }
 0x2b6   :  { %v399_v19 = vmul.f32 %v671_v17, %v398_v18 }
 0x2b7   :  { %v515_v15 = vsub.f32 1.0, %v514_v14 }
 0x2b8   :  { %v400_v20 = vmul.f32 0.5, %v399_v19 }
 0x2ba   :  { %v401_v21 = vsub.f32 1.5, %v400_v20  ;;  %v516_v20 = vmul.f32 %v673_v13, %v515_v15 }
 0x2bc   :  { %v402_v22 = vmul.f32 %v671_v17, %v401_v21 }
 0x2be   :  { %v406_v23 = vsel %vm405_vm6, %v671_v17, %v402_v22 }
 0x2bf   :  { %v409_v24 = vmul.f32 %v406_v23, %v359_v1  ;;  %v410_v25 = vmul.f32 %v406_v23, %v360_v63  ;;  %v517_v23 = vadd.f32 %v673_v13, %v516_v20 }
 0x2c1   :  { %643 = vmatmul.msk.f32.gmra.mxu2 %vm186_vm10, %v409_v24 }
 0x2c9   :  { %644 = vmatmul.msk.f32.gmra.mxu2 %vm186_vm10, %v410_v25  ;;  %v519_v25 = vsel %vm518_vm9, %v673_v13, %v517_v23 }
 0x31c   :  { %v441_v27 = vpop.f32.mrf.mxu2 }
 0x31d   :  { %v442_v30 = vadd.f32 %v653_v28, %v441_v27 }
 0x31f   :  { %v453_v33 = vsel %vm186_vm10, %v442_v30, 0.0  ;;  %v473_v37 = vsel %vm186_vm10, %v442_v30, -inf }
 0x324   :  { %v444_v31 = vpop.f32.mrf.mxu2 }
 0x325   :  { %v445_v32 = vadd.f32 %v653_v28, %v444_v31 }
 0x327   :  { %v454_v34 = vsel %vm186_vm10, %v445_v32, 0.0  ;;  %v474_v36 = vsel %vm186_vm10, %v445_v32, -inf }
 0x328   :  { %v455_v35 = vadd.f32 %v454_v34, %v453_v33  ;;  %v475_v38 = vmax.f32 %v473_v37, %v474_v36  ;;  %v547_v36 = vld [vmem:[%s917_s1 + $0x18] sm:$0xff] }
 0x32a   :  { %v456_v40 = vrot.slane %v455_v35, 4  ;;  %v476_v41 = vrot.slane %v475_v38, 4 }
 0x32c   :  { %v457_v42 = vadd.f32 %v456_v40, %v455_v35  ;;  %v477_v44 = vmax.f32 %v475_v38, %v476_v41  ;;  %v548_v35 = vld [vmem:[%s917_s1 + $0x20] sm:$0xff]  ;;  %v564_v41 = vld [vmem:[%s917_s1 + $0x98] sm:$0xff] }
 0x32d   :  { %586 = vmatpush.msra.mxu3 %v548_v35  ;;  %v565_v40 = vld [vmem:[%s917_s1 + $0xa0] sm:$0xff] }
 0x32e   :  { %v458_v47 = vrot.slane %v457_v42, 2  ;;  %v478_v52 = vrot.slane %v477_v44, 2  ;;  %594 = vmatpush.msrb.mxu0 %v565_v40 }
 0x32f   :  { %587 = vmatpush.msra.mxu3 %v547_v36 }
 0x330   :  { %v459_v55 = vadd.f32 %v458_v47, %v457_v42  ;;  %v479_v58 = vmax.f32 %v477_v44, %v478_v52  ;;  %595 = vmatpush.msrb.mxu0 %v564_v41  ;;  %v561_v47 = vld [vmem:[%s917_s1 + $0x80] sm:$0xff] }
 0x331   :  { %v557_v52 = vld [vmem:[%s917_s1 + $0x60] sm:$0xff] }
 0x332   :  { %v460_v26 = vrot.slane %v459_v55, 1  ;;  %v480_v1 = vrot.slane %v479_v58, 1 }
 0x334   :  { %v461_v2 = vadd.f32 %v460_v26, %v459_v55  ;;  %v481_v6 = vmax.f32 %v479_v58, %v480_v1  ;;  %v554_v58 = vld [vmem:[%s917_s1 + $0x48] sm:$0xff]  ;;  %v655_v1 = vld [vmem:[%s918_s2 + $0x4] ss:$0 sm:$0xff] }
 0x336   :  { %v471_v10 = vmul.f32 %v461_v2, %v746_v29 }
 0x344   :  { %v447_v39 = vpop.f32.mrf.mxu2 }
 0x345   :  { %v448_v43 = vadd.f32 %v653_v28, %v447_v39 }
 0x347   :  { %v462_v48 = vsel %vm186_vm10, %v448_v43, 0.0  ;;  %v482_v49 = vsel %vm186_vm10, %v448_v43, -inf  ;;  %v563_v43 = vld [vmem:[%s917_s1 + $0x90] sm:$0xff] }
 0x348   :  { %596 = vmatpush.msrb.mxu0 %v563_v43 }
 0x34c   :  { %v450_v45 = vpop.f32.mrf.mxu2 }
 0x34d   :  { %v451_v46 = vadd.f32 %v653_v28, %v450_v45  ;;  %v562_v45 = vld [vmem:[%s917_s1 + $0x88] sm:$0xff] }
 0x34e   :  { %597 = vmatpush.msrb.mxu0 %v562_v45 }
 0x34f   :  { %v463_v50 = vsel %vm186_vm10, %v451_v46, 0.0  ;;  %v483_v51 = vsel %vm186_vm10, %v451_v46, -inf }
 0x350   :  { %v464_v53 = vadd.f32 %v463_v50, %v462_v48  ;;  %v484_v54 = vmax.f32 %v482_v49, %v483_v51  ;;  %v560_v48 = vld [vmem:[%s917_s1 + $0x78] sm:$0xff]  ;;  %598 = vmatpush.msrb.mxu0 %v561_v47  ;;  %v559_v49 = vld [vmem:[%s917_s1 + $0x70] sm:$0xff]  ;;  %v558_v50 = vld [vmem:[%s917_s1 + $0x68] sm:$0xff] }
 0x352   :  { %v465_v56 = vrot.slane %v464_v53, 4  ;;  %v485_v57 = vrot.slane %v484_v54, 4  ;;  %599 = vmatpush.msrb.mxu0 %v560_v48 }
 0x354   :  { %v466_v59 = vadd.f32 %v465_v56, %v464_v53  ;;  %v486_v60 = vmax.f32 %v484_v54, %v485_v57  ;;  %600 = vmatpush.msrb.mxu0 %v559_v49  ;;  %v556_v54 = vld [vmem:[%s917_s1 + $0x58] sm:$0xff]  ;;  %v555_v56 = vld [vmem:[%s917_s1 + $0x50] sm:$0xff] }
 0x356   :  { %v467_v61 = vrot.slane %v466_v59, 2  ;;  %v487_v62 = vrot.slane %v486_v60, 2  ;;  %601 = vmatpush.msrb.mxu0 %v558_v50 }
 0x358   :  { %v468_v63 = vadd.f32 %v467_v61, %v466_v59  ;;  %v488_v0 = vmax.f32 %v486_v60, %v487_v62  ;;  %602 = vmatpush.msrb.mxu0 %v557_v52  ;;  %v553_v60 = vld [vmem:[%s917_s1 + $0x40] sm:$0xff]  ;;  %v552_v62 = vld [vmem:[%s917_s1 + $0x38] sm:$0xff] }
 0x359   :  { %v654_v61 = vld [vmem:[%s918_s2 + $0x3] ss:$0 sm:$0xff] }
 0x35a   :  { %v469_v3 = vrot.slane %v468_v63, 1  ;;  %v489_v4 = vrot.slane %v488_v0, 1  ;;  %603 = vmatpush.msrb.mxu0 %v556_v54 }
 0x35c   :  { %v470_v5 = vadd.f32 %v469_v3, %v468_v63  ;;  %v490_v7 = vmax.f32 %v488_v0, %v489_v4  ;;  %604 = vmatpush.msrb.mxu0 %v555_v56  ;;  %v551_v4 = vld [vmem:[%s917_s1 + $0x30] sm:$0xff] }
 0x35e   :  { %v498_v8 = vsel %vm493_vm7, %v490_v7, %v481_v6  ;;  %v472_v9 = vmul.f32 %v470_v5, %v746_v29  ;;  %605 = vmatpush.msrb.mxu0 %v554_v58  ;;  %v550_v5 = vld [vmem:[%s917_s1 + $0x28] sm:$0xff]  ;;  %v656_v6 = vld [vmem:[%s918_s2 + $0x5] ss:$0 sm:$0xff] }
 0x35f   :  { %499 = vrot.lane.b32.xlu2 %v498_v8, %s704_s5 }
 0x360   :  { %v494_v11 = vsel %vm493_vm7, %v472_v9, %v471_v10  ;;  %606 = vmatpush.msrb.mxu0 %v553_v60  ;;  %v657_v10 = vld [vmem:[%s918_s2 + $0x6] ss:$0 sm:$0xff] }
 0x362   :  { %607 = vmatpush.msrb.mxu0 %v552_v62 }
 0x364   :  { %608 = vmatpush.msrb.mxu0 %v551_v4 }
 0x366   :  { %609 = vmatpush.msrb.mxu0 %v550_v5 }
 0x3b9   :  { %v500_v16 = vpop.permute.xlu2 %499 }
 0x3ba   :  { %v502_v17 = vsel %vm186_vm10, %v494_v11, %v500_v16 }
 0x3bb   :  { %v506_v18 = vsel %vm505_vm8, %v502_v17, 0.0 }
 0x3bc   :  { %v507_v19 = vrot.slane %v506_v18, 4 }
 0x3be   :  { %v508_v21 = vadd.f32 %v507_v19, %v506_v18 }
 0x3c0   :  { %v509_v22 = vrot.slane %v508_v21, 2 }
 0x3c2   :  { %v510_v29 = vadd.f32 %v509_v22, %v508_v21 }
 0x3c4   :  { %v511_v24 = vrot.slane %v510_v29, 1 }
 0x3c6   :  { %v512_v27 = vadd.f32 %v511_v24, %v510_v29 }
 0x3c8   :  { %v520_v28 = vmul.f32 %v519_v25, %v512_v27 }
 0x3ca   :  { %v521_v30 = vsub.f32 %v502_v17, %v520_v28 }
 0x3cc   :  { %v522_v31 = vmul.f32 %v521_v30, %v521_v30 }
 0x3ce   :  { %v523_v32 = vsel %vm505_vm8, %v522_v31, 0.0 }
 0x3cf   :  { %v524_v33 = vrot.slane %v523_v32, 4 }
 0x3d1   :  { %v525_v34 = vadd.f32 %v524_v33, %v523_v32 }
 0x3d3   :  { %v526_v37 = vrot.slane %v525_v34, 2 }
 0x3d5   :  { %v527_v38 = vadd.f32 %v526_v37, %v525_v34 }
 0x3d7   :  { %v528_v39 = vrot.slane %v527_v38, 1 }
 0x3d9   :  { %v529_v42 = vadd.f32 %v528_v39, %v527_v38 }
 0x3db   :  { %v530_v44 = vmul.f32 %v529_v42, %v519_v25 }
 0x3dd   :  { %v531_v46 = vadd.f32 1e-05, %v530_v44 }
 0x3df   :  { %674 = vrsqrt.f32 %v531_v46  ;;  %vm538_vm11 = vweird.f32 %v531_v46 }
 0x3e5   :  { %v675_v51 = vpop.eup %674 }
 0x3e6   :  { %v533_v53 = vmul.f32 %v675_v51, %v531_v46  ;;  %vm539_vm10 = vweird.f32 %v675_v51 }
 0x3e7   :  { %vm540_vm12 = vmor %vm538_vm11, %vm539_vm10 }
 0x3e8   :  { %v534_v55 = vmul.f32 %v675_v51, %v533_v53 }
 0x3ea   :  { %v535_v57 = vmul.f32 0.5, %v534_v55 }
 0x3ec   :  { %v536_v59 = vsub.f32 1.5, %v535_v57 }
 0x3ee   :  { %v537_v26 = vmul.f32 %v675_v51, %v536_v59 }
 0x3f0   :  { %v541_v63 = vsel %vm540_vm12, %v675_v51, %v537_v26 }
 0x3f1   :  { %v542_v0 = vmul.f32 %v541_v63, %v521_v30 }
 0x3f3   :  { %v544_v2 = vmul.f32 %v654_v61, %v542_v0 }
 0x3f5   :  { %v546_v3 = vadd.f32 %v655_v1, %v544_v2 }
 0x3f7   :  { %645 = vmatmul.msk.f32.vlgmr.msra.gmra.mxu3 %vm568_vm13, %v546_v3 }
 0x47a   :  { %v589_v7 = vpop.f32.mrf.mxu3 }
 0x47b   :  { %v590_v8 = vadd.f32 %v656_v6, %v589_v7 }
 0x47d   :  { %v592_v9 = vmax.f32 %v590_v8, 0.0 }
 0x47f   :  { %610 = vmatmul.f32.vlgmr.msrb.gmra.mxu0 %v592_v9 }
 0x4fc   :  { %v611_v11 = vpop.f32.mrf.mxu0 }
 0x4fd   :  { %v612_v12 = vadd.f32 %v657_v10, %v611_v11 }
 0x4ff   :  { %615 = vst.msk [vmem:[#allocation2] sm:$0x3] %vm614_vm14, %v612_v12 }
 0x500   :  { %626 = dma.vmem_to_hbm [thread:$0]  %s622_s22, 32, %s624_s25, [#allocation3]  }
 0x501   :  { %700 = dma.done.wait [#allocation3], 32  }
 0x502   :  { %701 = vsyncadd [#allocation3], 4294967264 }
 0x503   :  { %631 = vsyncpa [#allocation3], 1 }

</bundles_post_ra>
